<compile_context>
chip_gen: v7x
topology: tpu7x:2x2x1
jax: 0.10.0
libtpu: 0.0.40
codegen_flags: <defaults>
</compile_context>

<pallas_src>
import jax
import jax.numpy as jnp
from jax.experimental import pallas as pl
from jax.experimental.pallas import tpu as pltpu

_CONST = 1.714285766124735   # v2 = v1 - (-c) == v1 + c
_LANES = 128                 # vreg lane width
_SUBLANES = 8                # vreg sublane count (f32)
_TILE_ROWS = 4096            # 4096*128*4B = 2 MiB per tile buffer
_SMALL_N = 4096              # below this, an XLA-fused elementwise is cheaper


def _linear_relu_kernel(w_ref, x_ref, o_ref):
    # w_ref: SMEM (1,) scalar weight; x_ref/o_ref: VMEM (block_rows, 128) tiles.
    o_ref[...] = jnp.maximum(x_ref[...] * w_ref[0] + _CONST, 0.0)


def model_forward(x, weight, *, tile_rows=_TILE_ROWS, force_pallas=False):
    """x: (..., 1) f32 (Linear(1,1) input), weight: (1, 1) f32 -> same shape as x."""
    orig_shape = x.shape
    n = x.size

    # Tiny inputs: pure launch-overhead regime -> fused XLA elementwise.
    if n <= _SMALL_N and not force_pallas:
        return jnp.maximum(x * weight.reshape(()) + _CONST, 0.0)

    # Lane-dense repack: (N,) -> (rows, 128). Pad only to an 8x128-element
    # multiple (one vreg tile), NOT to a tile_rows multiple.
    flat = x.reshape(-1)
    rows = pl.cdiv(n, _LANES)
    rows_padded = pl.cdiv(rows, _SUBLANES) * _SUBLANES
    pad = rows_padded * _LANES - n
    if pad:
        flat = jnp.pad(flat, (0, pad))
    x2d = flat.reshape(rows_padded, _LANES)

    if rows_padded <= tile_rows:
        # Single block == full array (always a legal block shape, zero waste).
        block_rows = rows_padded
        grid = (1,)
    else:
        # Gridded path: (tile_rows, 128) tiles, divisible by (8, 128); ragged
        # last block handled by Pallas boundary masking (no tile-multiple pad).
        block_rows = tile_rows
        grid = (pl.cdiv(rows_padded, tile_rows),)

    w1d = weight.reshape(1)  # 1-D SMEM scalar (avoids 2-D SMEM padding)

    out2d = pl.pallas_call(
        _linear_relu_kernel,
        out_shape=jax.ShapeDtypeStruct((rows_padded, _LANES), x.dtype),
        grid=grid,
        in_specs=[
            pl.BlockSpec(memory_space=pltpu.SMEM),                   # weight scalar
            pl.BlockSpec((block_rows, _LANES), lambda i: (i, 0)),    # x tile
        ],
        out_specs=pl.BlockSpec((block_rows, _LANES), lambda i: (i, 0)),
        compiler_params=pltpu.CompilerParams(
            dimension_semantics=("parallel",),   # megacore sharding on v7x
        ),
    )(w1d, x2d)

    return out2d.reshape(-1)[:n].reshape(orig_shape)


if __name__ == "__main__":
    key = jax.random.PRNGKey(0)
    kx, kw, kx2, kx3 = jax.random.split(key, 4)

    # Small shape consistent with the module: x1=torch.randn(64) with
    # Linear(1,1) implies a trailing feature dim of 1 -> (64, 1).
    x = jax.random.normal(kx, (64, 1), dtype=jnp.float32)
    # nn.Linear(1,1) default init: U(-1/sqrt(1), 1/sqrt(1)) = U(-1, 1)
    weight = jax.random.uniform(kw, (1, 1), dtype=jnp.float32, minval=-1.0, maxval=1.0)
    ref = jnp.maximum(x @ weight.T + _CONST, 0.0)

    # 1) Default small path (XLA-fused bypass).
    out = jax.block_until_ready(model_forward(x, weight))
    assert out.shape == (64, 1)
    assert jnp.allclose(out, ref, atol=1e-6), "mismatch vs reference (small, bypass)"

    # 2) Same small shape forced through the Pallas single-block path.
    out_p = jax.block_until_ready(model_forward(x, weight, force_pallas=True))
    assert jnp.allclose(out_p, ref, atol=1e-6), "mismatch vs reference (small, pallas)"

    # 3) Medium input: single full-array block (552 rows <= 4096), ~280 KB.
    x_mid = jax.random.normal(kx2, (70_000, 1), dtype=jnp.float32)
    out_mid = jax.block_until_ready(model_forward(x_mid, weight))
    ref_mid = jnp.maximum(x_mid @ weight.T + _CONST, 0.0)
    assert jnp.allclose(out_mid, ref_mid, atol=1e-6), "mismatch vs reference (single block)"

    # 4) Larger input: gridded path with a ragged last tile (~5 MB), exercises
    #    the multi-tile parallel grid and boundary-masked stores.
    x_big = jax.random.normal(kx3, (1_300_000, 1), dtype=jnp.float32)
    out_big = jax.block_until_ready(model_forward(x_big, weight))
    ref_big = jnp.maximum(x_big @ weight.T + _CONST, 0.0)
    assert jnp.allclose(out_big, ref_big, atol=1e-6), "mismatch vs reference (gridded)"

    print("KERNEL_OK")
</pallas_src>

<mosaic_0001>
module attributes {stable_mosaic.version = 11 : i64} {
  func.func @_linear_relu_kernel(%arg0: i32, %arg1: memref<1xf32, #tpu.memory_space<smem>>, %arg2: memref<8x128xf32, #tpu.memory_space<vmem>>, %arg3: memref<8x128xf32, #tpu.memory_space<vmem>>) attributes {dimension_semantics = [#tpu.dimension_semantics<parallel>], iteration_bounds = array<i64: 1>, scalar_prefetch = 0 : i64, scratch_operands = 0 : i64, tpu.core_type = #tpu.core_type<tc>, window_params = [{transform_indices = @transform_0, window_bounds = array<i64: 1>}, {transform_indices = @transform_1, window_bounds = array<i64: 8, 128>}, {transform_indices = @transform_2, window_bounds = array<i64: 8, 128>}]} {
    %c0 = arith.constant 0 : index
    %c0_0 = arith.constant 0 : index
    %0 = vector.load %arg2[%c0, %c0_0] : memref<8x128xf32, #tpu.memory_space<vmem>>, vector<8x128xf32>
    %c0_1 = arith.constant 0 : index
    %1 = memref.load %arg1[%c0_1] : memref<1xf32, #tpu.memory_space<smem>>
    %2 = vector.broadcast %1 : f32 to vector<8x128xf32>
    %3 = arith.mulf %0, %2 : vector<8x128xf32>
    %cst = arith.constant 1.71428573 : f32
    %4 = vector.broadcast %cst : f32 to vector<8x128xf32>
    %5 = arith.addf %3, %4 : vector<8x128xf32>
    %cst_2 = arith.constant 0.000000e+00 : f32
    %6 = vector.broadcast %cst_2 : f32 to vector<8x128xf32>
    %7 = arith.maximumf %5, %6 : vector<8x128xf32>
    %c0_3 = arith.constant 0 : index
    %c0_4 = arith.constant 0 : index
    %8 = vector.load %arg3[%c0_3, %c0_4] : memref<8x128xf32, #tpu.memory_space<vmem>>, vector<8x128xf32>
    tpu.vector_store %arg3[%c0_3, %c0_4], %7 {strides = array<i32>} : memref<8x128xf32, #tpu.memory_space<vmem>>, vector<8x128xf32>,
    return
  }
  func.func @transform_0(%arg0: i32) -> i32 {
    %c0_i32 = arith.constant 0 : i32
    %c0_i32_0 = arith.constant 0 : i32
    return %c0_i32 : i32
  }
  func.func @transform_1(%arg0: i32) -> (i32, i32) {
    %c0_i32 = arith.constant 0 : i32
    %c0_i32_0 = arith.constant 0 : i32
    return %arg0, %c0_i32 : i32, i32
  }
  func.func @transform_2(%arg0: i32) -> (i32, i32) {
    %c0_i32 = arith.constant 0 : i32
    %c0_i32_0 = arith.constant 0 : i32
    return %arg0, %c0_i32 : i32, i32
  }
}

</mosaic_0001>

<bundles_post_ra>
// kernel: tpu_custom_call.1
= control target key start
LH: loop header
LB: loop body
LE: loop exit
PB: predicated region body
PF: predicated region fallthrough
CT: control target
= control target key end

     0   :  { %8 = vsyncpa [#allocation4], 0  ;;  %s141_s0 = inlined_call_operand.<no memory space> [shape: f32[1], index: 0, kind: input, shape index: {}]   ;;  %s142_s1 = inlined_call_operand.hbm [shape: f32[8,128], index: 1, kind: input, shape index: {}]   ;;  %s143_s2 = inlined_call_operand.hbm [shape: f32[8,128], index: 2, kind: output, shape index: {}]  }
   0x1   :  { %9 = vsyncpa [#allocation5], 0  ;;  %s97_s9 = smov [#allocation3]   ;;  %s49_s13 = scalar_lea.hbm %s142_s1, 128 }
   0x2   :  { %s18_s10 = sshll.u32 %s97_s9, 4  ;;  %p50_p0 = scmp.ne.s32.totalorder %s142_s1, %s49_s13  ;;  %s19_s10 = int_to_ptr.vmem [resolvable:$true] %s18_s10 }
   0x3   :  { %p53_p1 = scmp.lt.u32.totalorder %s49_s13, %s142_s1 }
   0x5   :  { %p55_p2 = pnand %p53_p1, %p50_p0 }
   0x7   :  { %58 = shalt.err (!%p55_p2)
}
   0x8   :  { %s59_s18 = scalar_lea.vmem %s19_s10, 128  ;;  %p64_p4 = scmp.lt.s32.totalorder %s19_s10, %s19_s10 }
   0x9   :  { %p60_p3 = scmp.ne.s32.totalorder %s19_s10, %s59_s18  ;;  %p65_p5 = scmp.lt.s32.totalorder %s59_s18, %s59_s18 }
   0xb   :  { %p66_p6 = por %p65_p5, %p64_p4 }
   0xd   :  { %p67_p7 = pnand %p66_p6, %p60_p3 }
   0xf   :  { %70 = shalt.err (!%p67_p7)
}
  0x10   :  { %21 = dma.hbm_to_vmem [thread:$0]  %s142_s1, 128, %s19_s10, [#allocation4]  }
  0x11   :  { %93 = dma.done.wait [#allocation4], 128  }
  0x12   :  { %94 = vsyncadd [#allocation4], 4294967168  ;;  %v27_v0 = vstv %s141_s0  ;;  %v25_v1 = vld [vmem:[#allocation3] sm:$0xff]  ;;  %s98_s23 = smov [#allocation6]  }
  0x13   :  { %v28_v2 = vmul.f32 %v27_v0, %v25_v1  ;;  %s38_s24 = sshll.u32 %s98_s23, 4  ;;  %s39_s24 = int_to_ptr.vmem [resolvable:$true] %s38_s24 }
  0x14   :  { %s71_s25 = scalar_lea.vmem %s39_s24, 128  ;;  %p76_p9 = scmp.lt.s32.totalorder %s39_s24, %s39_s24 }
  0x15   :  { %v29_v3 = vadd.f32 1.7142857, %v28_v2  ;;  %p72_p8 = scmp.ne.s32.totalorder %s39_s24, %s71_s25  ;;  %p77_p10 = scmp.lt.s32.totalorder %s71_s25, %s71_s25 }
  0x17   :  { %v30_v4 = vmax.f32 %v29_v3, 0.0  ;;  %p78_p11 = por %p77_p10, %p76_p9 }
  0x19   :  { %31 = vst [vmem:[#allocation6] sm:$0xff] %v30_v4  ;;  %p79_p12 = pnand %p78_p11, %p72_p8 }
  0x1b   :  { %82 = shalt.err (!%p79_p12)
}
  0x1c   :  { %s83_s27 = scalar_lea.hbm %s143_s2, 128 }
  0x1d   :  { %p84_p13 = scmp.ne.s32.totalorder %s143_s2, %s83_s27  ;;  %p87_p0 = scmp.lt.u32.totalorder %s83_s27, %s143_s2 }
  0x1f   :  { %p89_p1 = pnand %p87_p0, %p84_p13 }
  0x21   :  { %92 = shalt.err (!%p89_p1)
}
  0x22   :  { %41 = dma.vmem_to_hbm [thread:$0]  %s39_s24, 128, %s143_s2, [#allocation5]  }
  0x23   :  { %95 = dma.done.wait [#allocation5], 128  }
  0x24   :  { %96 = vsyncadd [#allocation5], 4294967168 }
  0x25   :  { %45 = vsyncpa [#allocation4], 1 }
  0x26   :  { %46 = vsyncpa [#allocation5], 1 }

</bundles_post_ra>
